<compile_context>
chip_gen: v7x
topology: tpu7x:2x2x1
jax: 0.10.0
libtpu: 0.0.40
codegen_flags: <defaults>
</compile_context>

<pallas_src>
import jax
import jax.numpy as jnp
from jax.experimental import pallas as pl
from jax.experimental.pallas import tpu as pltpu


def _round_up(x: int, m: int) -> int:
    return ((x + m - 1) // m) * m


def _round_down(x: int, m: int) -> int:
    return (x // m) * m


def _chomp_copy_kernel(x_ref, o_ref):
    # One (TR, TL) tile of the kept region; plain lane-dense copy.
    # Partial edge blocks on either axis are masked automatically on writeback.
    o_ref[...] = x_ref[...]


def chomp1d(
    x: jax.Array,
    chomp_size: int,
    *,
    tile_bytes: int = 2 << 20,   # ~2 MiB per buffer; 4 buffers double-buffered = 8 MiB
    max_lanes: int = 4096,       # cap on a single column block (lanes)
    force_pallas: bool = False,  # run the Pallas path even for tiny shapes (tests)
) -> jax.Array:
    """Drop the last `chomp_size` entries along the trailing (time) axis of (N, C, L)."""
    assert x.ndim == 3, "expected (N, C, L)"
    n, c, l = x.shape
    # PyTorch chomp_size=0 gives an empty tensor (x[:, :, :-0]); intentionally excluded.
    assert 0 < chomp_size < l, "chomp_size must be in (0, L)"
    l_out = l - chomp_size
    rows = n * c

    itemsize = jnp.dtype(x.dtype).itemsize
    # Sublane multiple depends on dtype packing (f32: 8, bf16: 16, int8/fp8: 32).
    sublane = {4: 8, 2: 16, 1: 32}.get(itemsize, 8)

    if not force_pallas and (l_out < 128 or rows < sublane):
        # Tiny kept region: lane/sublane-masked stores waste most of the store
        # bandwidth and a standalone kernel adds a full HBM round trip; let XLA
        # fuse the slice into the consumer instead.
        return x[:, :, :l_out]

    l_pad = _round_up(l_out, 128)        # lane-dense column granularity
    rows_pad = _round_up(rows, sublane)  # sublane-dense row granularity

    # Column block: span the entire kept L in one block when it fits the lane
    # cap (one contiguous writeback DMA per row block, no tail re-reads).
    TL = l_pad if l_pad <= max_lanes else max_lanes

    # Row block: fill the per-buffer byte budget, clamped to the problem size.
    TR = max(sublane, _round_down(tile_bytes // (TL * itemsize), sublane))
    TR = min(TR, rows_pad)

    # v7x megacore: if the whole row range collapsed into a single block, split
    # it so both TensorCores get work (harmless on single-TC v5e/v6e).
    if rows_pad <= TR and rows >= 2 * sublane:
        TR = _round_up(-(-rows // 2), sublane)

    grid = (pl.cdiv(rows, TR), pl.cdiv(l_out, TL))

    # Free reshape for a contiguous row-major (N, C, L) array.
    x2 = x.reshape(rows, l)

    out2 = pl.pallas_call(
        _chomp_copy_kernel,
        out_shape=jax.ShapeDtypeStruct((rows, l_out), x.dtype),
        grid=grid,
        # Input and output share the same column-block index, so only the kept
        # region (plus at most one partial trailing chunk) is ever DMA'd in.
        in_specs=[pl.BlockSpec((TR, TL), lambda r, t: (r, t))],
        out_specs=pl.BlockSpec((TR, TL), lambda r, t: (r, t)),
        compiler_params=pltpu.CompilerParams(
            dimension_semantics=("parallel", "parallel"),
        ),
        cost_estimate=pl.CostEstimate(
            flops=0,
            transcendentals=0,
            bytes_accessed=2 * rows * l_out * itemsize,
        ),
    )(x2)

    return out2.reshape(n, c, l_out)


if __name__ == "__main__":
    key = jax.random.PRNGKey(0)

    # --- Small shape consistent with the module (N=2, C=4, L=16), chomp=3 ---
    N, C, L = 2, 4, 16
    chomp_size = 3
    x = jax.random.normal(key, (N, C, L), dtype=jnp.float32)

    # Force the Pallas path so the kernel itself is exercised at the test shape.
    out = jax.block_until_ready(chomp1d(x, chomp_size, force_pallas=True))
    ref = x[:, :, :-chomp_size]
    assert out.shape == (N, C, L - chomp_size), out.shape
    assert out.dtype == x.dtype
    assert jnp.array_equal(out, ref), "Pallas chomp mismatch vs reference slice"

    # Default path for this tiny shape takes the fused-slice fast path; it must
    # agree bit-for-bit with the kernel output.
    out_fast = jax.block_until_ready(chomp1d(x, chomp_size))
    assert jnp.array_equal(out_fast, ref), "fast-path chomp mismatch"

    # --- Non-aligned shape: partial blocks on both axes + 2-way row split ---
    x2 = jax.random.normal(jax.random.PRNGKey(0), (3, 10, 300), dtype=jnp.float32)
    out2 = jax.block_until_ready(chomp1d(x2, 7))
    assert jnp.array_equal(out2, x2[:, :, :-7]), "Pallas chomp mismatch (partial blocks)"

    # --- Lane-aligned-ish shape: single column block spanning the kept L ---
    x3 = jax.random.normal(jax.random.PRNGKey(0), (2, 64, 1024), dtype=jnp.float32)
    out3 = jax.block_until_ready(chomp1d(x3, 64))
    assert jnp.array_equal(out3, x3[:, :, :-64]), "Pallas chomp mismatch (wide L)"

    # --- bf16: sublane packing path (sublane group = 16) ---
    x4 = jax.random.normal(jax.random.PRNGKey(0), (2, 16, 256), dtype=jnp.bfloat16)
    out4 = jax.block_until_ready(chomp1d(x4, 5))
    assert jnp.array_equal(out4, x4[:, :, :-5]), "Pallas chomp mismatch (bf16)"

    print("KERNEL_OK")
</pallas_src>

<mosaic_0001>
module attributes {stable_mosaic.version = 11 : i64} {
  func.func @_chomp_copy_kernel(%arg0: i32, %arg1: i32, %arg2: memref<8x128xf32, #tpu.memory_space<vmem>>, %arg3: memref<8x128xf32, #tpu.memory_space<vmem>>) attributes {dimension_semantics = [#tpu.dimension_semantics<parallel>, #tpu.dimension_semantics<parallel>], iteration_bounds = array<i64: 1, 1>, scalar_prefetch = 0 : i64, scratch_operands = 0 : i64, tpu.core_type = #tpu.core_type<tc>, window_params = [{transform_indices = @transform_0, window_bounds = array<i64: 8, 128>}, {transform_indices = @transform_1, window_bounds = array<i64: 8, 128>}]} {
    %c0 = arith.constant 0 : index
    %c0_0 = arith.constant 0 : index
    %0 = vector.load %arg2[%c0, %c0_0] : memref<8x128xf32, #tpu.memory_space<vmem>>, vector<8x128xf32>
    %c0_1 = arith.constant 0 : index
    %c0_2 = arith.constant 0 : index
    %1 = vector.load %arg3[%c0_1, %c0_2] : memref<8x128xf32, #tpu.memory_space<vmem>>, vector<8x128xf32>
    tpu.vector_store %arg3[%c0_1, %c0_2], %0 {strides = array<i32>} : memref<8x128xf32, #tpu.memory_space<vmem>>, vector<8x128xf32>,
    return
  }
  func.func @transform_0(%arg0: i32, %arg1: i32) -> (i32, i32) {
    %c0_i32 = arith.constant 0 : i32
    return %arg0, %arg1 : i32, i32
  }
  func.func @transform_1(%arg0: i32, %arg1: i32) -> (i32, i32) {
    %c0_i32 = arith.constant 0 : i32
    return %arg0, %arg1 : i32, i32
  }
}

</mosaic_0001>

<bundles_post_ra>
// kernel: tpu_custom_call.1
= control target key start
LH: loop header
LB: loop body
LE: loop exit
PB: predicated region body
PF: predicated region fallthrough
CT: control target
= control target key end

     0   :  { %6 = vsyncpa [#allocation3], 0  ;;  %s124_s0 = inlined_call_operand.hbm [shape: f32[8,16], index: 0, kind: input, shape index: {}]   ;;  %s125_s1 = inlined_call_operand.hbm [shape: f32[8,13], index: 1, kind: output, shape index: {}]  }
   0x1   :  { %7 = vsyncpa [#allocation4], 0  ;;  %s88_s6 = smov [#allocation2]   ;;  %s40_s10 = scalar_lea.hbm %s124_s0, 128 }
   0x2   :  { %s14_s7 = sshll.u32 %s88_s6, 4  ;;  %p41_p0 = scmp.ne.s32.totalorder %s124_s0, %s40_s10  ;;  %s15_s7 = int_to_ptr.vmem [resolvable:$true] %s14_s7 }
   0x3   :  { %p44_p1 = scmp.lt.u32.totalorder %s40_s10, %s124_s0 }
   0x5   :  { %p46_p2 = pnand %p44_p1, %p41_p0 }
   0x7   :  { %49 = shalt.err (!%p46_p2)
}
   0x8   :  { %s50_s15 = scalar_lea.vmem %s15_s7, 128  ;;  %p55_p4 = scmp.lt.s32.totalorder %s15_s7, %s15_s7 }
   0x9   :  { %p51_p3 = scmp.ne.s32.totalorder %s15_s7, %s50_s15  ;;  %p56_p5 = scmp.lt.s32.totalorder %s50_s15, %s50_s15 }
   0xb   :  { %p57_p6 = por %p56_p5, %p55_p4 }
   0xd   :  { %p58_p7 = pnand %p57_p6, %p51_p3 }
   0xf   :  { %61 = shalt.err (!%p58_p7)
}
  0x10   :  { %17 = dma.hbm_to_vmem [thread:$0]  %s124_s0, 128, %s15_s7, [#allocation3]  }
  0x11   :  { %84 = dma.done.wait [#allocation3], 128  }
  0x12   :  { %85 = vsyncadd [#allocation3], 4294967168  ;;  %s89_s18 = smov [#allocation5]   ;;  %v21_v0 = vld [vmem:[#allocation2] sm:$0xff] }
  0x13   :  { %s29_s19 = sshll.u32 %s89_s18, 4  ;;  %22 = vst [vmem:[#allocation5] sm:$0xff] %v21_v0  ;;  %s30_s19 = int_to_ptr.vmem [resolvable:$true] %s29_s19 }
  0x14   :  { %s62_s20 = scalar_lea.vmem %s30_s19, 128  ;;  %p67_p9 = scmp.lt.s32.totalorder %s30_s19, %s30_s19 }
  0x15   :  { %p63_p8 = scmp.ne.s32.totalorder %s30_s19, %s62_s20  ;;  %p68_p10 = scmp.lt.s32.totalorder %s62_s20, %s62_s20 }
  0x17   :  { %p69_p11 = por %p68_p10, %p67_p9 }
  0x19   :  { %p70_p12 = pnand %p69_p11, %p63_p8 }
  0x1b   :  { %73 = shalt.err (!%p70_p12)
}
  0x1c   :  { %s74_s23 = scalar_lea.hbm %s125_s1, 128 }
  0x1d   :  { %p75_p13 = scmp.ne.s32.totalorder %s125_s1, %s74_s23  ;;  %p78_p0 = scmp.lt.u32.totalorder %s74_s23, %s125_s1 }
  0x1f   :  { %p80_p1 = pnand %p78_p0, %p75_p13 }
  0x21   :  { %83 = shalt.err (!%p80_p1)
}
  0x22   :  { %32 = dma.vmem_to_hbm [thread:$0]  %s30_s19, 128, %s125_s1, [#allocation4]  }
  0x23   :  { %86 = dma.done.wait [#allocation4], 128  }
  0x24   :  { %87 = vsyncadd [#allocation4], 4294967168 }
  0x25   :  { %36 = vsyncpa [#allocation3], 1 }
  0x26   :  { %37 = vsyncpa [#allocation4], 1 }

</bundles_post_ra>
